<compile_context>
chip_gen: v6e
topology: v6e:2x2x1
jax: 0.10.0
libtpu: 0.0.40
codegen_flags: <defaults>
</compile_context>

<pallas_src>
import functools

import jax
import jax.numpy as jnp
from jax.experimental import pallas as pl
from jax.experimental.pallas import tpu as pltpu


def _round_down(value, multiple):
    return (value // multiple) * multiple


def _round_up(value, multiple):
    return -(-value // multiple) * multiple


def _chip_defaults():
    """Per-generation (target_block_bytes, vmem_limit_bytes)."""
    try:
        kind = jax.devices()[0].device_kind.lower()
    except Exception:
        kind = ""
    if "v7" in kind or "7x" in kind:
        # 3.2 TB/s HBM per TC: 8 MiB blocks amortize per-step overhead to <5%.
        # 2 x (in + out) buffers = 32 MiB -> raise scoped VMEM explicitly.
        return 8 * 1024 * 1024, 40 * 1024 * 1024
    if "v6" in kind:
        return 4 * 1024 * 1024, None      # 16 MiB double-buffered < 32 MiB default
    # v5e / unknown: conservative; 2 MiB blocks -> 8 MiB < 16 MiB default scoped VMEM.
    return 2 * 1024 * 1024, None


# ---------------------------------------------------------------------------
# Fast path kernel: branch is uniform per block (program_id(0) == half index).
# ---------------------------------------------------------------------------
def _roundlu_split_kernel(x_ref, o_ref, *, granularity):
    @pl.when(pl.program_id(0) == 0)
    def _relu_half():
        o_ref[...] = jnp.maximum(x_ref[...], 0).astype(o_ref.dtype)

    @pl.when(pl.program_id(0) > 0)
    def _fsq_half():
        z = jnp.tanh(x_ref[...].astype(jnp.float32)) * jnp.float32(granularity)
        o_ref[...] = jnp.round(z).astype(o_ref.dtype)


# ---------------------------------------------------------------------------
# Fallback kernel (odd C or mid == 0): per-row channel mask on the flat
# (B*C, H*W) view; mask built on a (rows, 1) column and broadcast by where.
# ---------------------------------------------------------------------------
def _roundlu_masked_kernel(x_ref, o_ref, *, channels, act_mid, granularity,
                           tile_rows):
    i = pl.program_id(0)
    x = x_ref[...]
    row_ids = jax.lax.broadcasted_iota(jnp.int32, (x.shape[0], 1), 0) + i * tile_rows
    is_relu = (row_ids % channels) < act_mid
    relu_branch = jnp.maximum(x, 0).astype(o_ref.dtype)
    z = jnp.tanh(x.astype(jnp.float32)) * jnp.float32(granularity)
    fsq_branch = jnp.round(z).astype(o_ref.dtype)
    o_ref[...] = jnp.where(is_relu, relu_branch, fsq_branch)


def _roundlu_even(x, mid, granularity, target_block_bytes, vmem_limit_bytes):
    B, C, H, W = x.shape
    L = H * W
    itemsize = jnp.dtype(x.dtype).itemsize
    sub = max(8, 32 // itemsize)          # sublane multiple for this dtype

    # Prefer a fully lane-dense flat view (B, 2, mid*L/128, 128): no padding
    # waste and unmasked 128-lane stores.  Otherwise keep (B, 2, mid, L) with
    # padding-aware byte accounting.
    if (mid * L) % 128 == 0:
        rows, cols = (mid * L) // 128, 128
    else:
        rows, cols = mid, L
    x4 = x.reshape(B, 2, rows, cols)

    # Lane (last-dim) tile: full extent or a 128-multiple within budget.
    if cols <= 128:
        tc = cols
    else:
        max_tc = max(128, _round_down(target_block_bytes // (sub * itemsize), 128))
        tc = cols if cols <= max_tc else max_tc
    ptc = _round_up(tc, 128)

    # Sublane tile: full extent or a `sub`-multiple within budget.
    if rows <= sub:
        tr = rows
    else:
        max_tr = max(sub, _round_down(target_block_bytes // (ptc * itemsize), sub))
        tr = rows if rows <= max_tr else max_tr
    ptr = _round_up(tr, sub)

    # Batch tile: grow the block further when one padded (tr, tc) slab is small.
    slab_bytes = ptr * ptc * itemsize
    bt = max(1, min(B, target_block_bytes // max(1, slab_bytes)))

    # Half axis leads the grid so the v7x 2-TC megacore split is exactly even.
    grid = (2, pl.cdiv(B, bt), pl.cdiv(rows, tr), pl.cdiv(cols, tc))
    block = (bt, 1, tr, tc)

    n_elems = x.size
    n_fsq = B * mid * L
    cost = pl.CostEstimate(
        flops=n_elems + 2 * n_fsq,
        transcendentals=n_fsq,
        bytes_accessed=2 * n_elems * itemsize,
    )

    out4 = pl.pallas_call(
        functools.partial(_roundlu_split_kernel, granularity=granularity),
        out_shape=jax.ShapeDtypeStruct((B, 2, rows, cols), x.dtype),
        grid=grid,
        in_specs=[pl.BlockSpec(block, lambda h, b, r, c: (b, h, r, c))],
        out_specs=pl.BlockSpec(block, lambda h, b, r, c: (b, h, r, c)),
        compiler_params=pltpu.CompilerParams(
            dimension_semantics=("parallel", "parallel", "parallel", "parallel"),
            vmem_limit_bytes=vmem_limit_bytes),
        cost_estimate=cost,
    )(x4)

    return out4.reshape(B, C, H, W)


def _roundlu_fallback(x, mid, granularity, target_block_bytes, vmem_limit_bytes):
    B, C, H, W = x.shape
    L = H * W
    R = B * C
    itemsize = jnp.dtype(x.dtype).itemsize
    sub = max(8, 32 // itemsize)

    x2 = x.reshape(R, L)

    if L <= 128:
        tc = L
    else:
        max_tc = max(128, _round_down(target_block_bytes // (sub * itemsize), 128))
        tc = L if L <= max_tc else max_tc
    ptc = _round_up(tc, 128)

    if R <= sub:
        tr = R
    else:
        max_tr = max(sub, _round_down(target_block_bytes // (ptc * itemsize), sub))
        tr = R if R <= max_tr else max_tr

    grid = (pl.cdiv(R, tr), pl.cdiv(L, tc))

    n_elems = x.size
    cost = pl.CostEstimate(
        flops=3 * n_elems,
        transcendentals=n_elems,
        bytes_accessed=2 * n_elems * itemsize,
    )

    out2 = pl.pallas_call(
        functools.partial(_roundlu_masked_kernel, channels=C, act_mid=mid,
                          granularity=granularity, tile_rows=tr),
        out_shape=jax.ShapeDtypeStruct((R, L), x.dtype),
        grid=grid,
        in_specs=[pl.BlockSpec((tr, tc), lambda i, j: (i, j))],
        out_specs=pl.BlockSpec((tr, tc), lambda i, j: (i, j)),
        compiler_params=pltpu.CompilerParams(
            dimension_semantics=("parallel", "parallel"),
            vmem_limit_bytes=vmem_limit_bytes),
        cost_estimate=cost,
    )(x2)

    return out2.reshape(B, C, H, W)


def roundlu(x, num_features, vocab_size, *, target_block_bytes=None,
            vmem_limit_bytes=None):
    """RoundLU forward. x: (B, C, H, W) with C == num_features. Same shape/dtype out."""
    B, C, H, W = x.shape
    assert C == num_features
    mid = num_features // 2
    granularity = vocab_size - 1

    default_bytes, default_vmem = _chip_defaults()
    if target_block_bytes is None:
        target_block_bytes = default_bytes
    if vmem_limit_bytes is None:
        vmem_limit_bytes = default_vmem

    if mid > 0 and C == 2 * mid:
        return _roundlu_even(x, mid, granularity, target_block_bytes,
                             vmem_limit_bytes)
    # Odd channel count (or a single channel): per-element channel-mask path.
    return _roundlu_fallback(x, mid, granularity, target_block_bytes,
                             vmem_limit_bytes)


def roundlu_ref(x, num_features, vocab_size):
    """Pure-JAX reference mirroring the PyTorch forward."""
    mid = num_features // 2
    g = vocab_size - 1
    xrelu = jnp.maximum(x[:, :mid], 0.0)
    z = jnp.tanh(x[:, mid:]) * g
    xfsq = jnp.round(z)
    return jnp.concatenate([xrelu, xfsq], axis=1)


if __name__ == "__main__":
    # Primary test (matches the module's intended small shape).
    B, C, H, W = 2, 4, 16, 16   # num_features = C = 4 -> act_mid = 2
    vocab_size = 5              # quantization_granularity = 4

    key = jax.random.PRNGKey(0)
    x = jax.random.normal(key, (B, C, H, W), dtype=jnp.float32) * 2.0

    out = roundlu(x, num_features=C, vocab_size=vocab_size)
    out = jax.block_until_ready(out)
    ref = roundlu_ref(x, num_features=C, vocab_size=vocab_size)
    assert out.shape == (B, C, H, W)
    assert jnp.allclose(out, ref, atol=1e-5, rtol=1e-5), "mismatch vs reference"

    # Secondary test: exercises batch tiling and the multi-block parallel grid.
    B2, C2, H2, W2 = 4, 8, 32, 32
    x2 = jax.random.normal(jax.random.PRNGKey(1), (B2, C2, H2, W2), jnp.float32)
    out2 = jax.block_until_ready(roundlu(x2, num_features=C2, vocab_size=9))
    ref2 = roundlu_ref(x2, num_features=C2, vocab_size=9)
    assert jnp.allclose(out2, ref2, atol=1e-5, rtol=1e-5), "mismatch vs reference (shape 2)"

    # Third test: odd channel count -> masked fallback path.
    B3, C3, H3, W3 = 2, 3, 8, 8
    x3 = jax.random.normal(jax.random.PRNGKey(2), (B3, C3, H3, W3), jnp.float32)
    out3 = jax.block_until_ready(roundlu(x3, num_features=C3, vocab_size=5))
    ref3 = roundlu_ref(x3, num_features=C3, vocab_size=5)
    assert jnp.allclose(out3, ref3, atol=1e-5, rtol=1e-5), "mismatch vs reference (odd C)"

    print("KERNEL_OK")
</pallas_src>

<mosaic_0001>
module attributes {stable_mosaic.version = 11 : i64} {
  func.func @_roundlu_split_kernel(%arg0: i32, %arg1: i32, %arg2: i32, %arg3: i32, %arg4: memref<2x1x4x128xf32, #tpu.memory_space<vmem>>, %arg5: memref<2x1x4x128xf32, #tpu.memory_space<vmem>>) attributes {dimension_semantics = [#tpu.dimension_semantics<parallel>, #tpu.dimension_semantics<parallel>, #tpu.dimension_semantics<parallel>, #tpu.dimension_semantics<parallel>], iteration_bounds = array<i64: 2, 1, 1, 1>, scalar_prefetch = 0 : i64, scratch_operands = 0 : i64, tpu.core_type = #tpu.core_type<tc>, window_params = [{transform_indices = @transform_0, window_bounds = array<i64: 2, 1, 4, 128>}, {transform_indices = @transform_1, window_bounds = array<i64: 2, 1, 4, 128>}]} {
    %c0_i32 = arith.constant 0 : i32
    %0 = arith.cmpi eq, %arg0, %c0_i32 : i32
    %1 = arith.extui %0 : i1 to i32
    %c0_i32_0 = arith.constant 0 : i32
    %2 = arith.cmpi ne, %1, %c0_i32_0 : i32
    scf.if %2 {
      %c0 = arith.constant 0 : index
      %c0_3 = arith.constant 0 : index
      %c0_4 = arith.constant 0 : index
      %c0_5 = arith.constant 0 : index
      %6 = vector.load %arg4[%c0, %c0_3, %c0_4, %c0_5] : memref<2x1x4x128xf32, #tpu.memory_space<vmem>>, vector<2x1x4x128xf32>
      %cst = arith.constant 0.000000e+00 : f32
      %7 = vector.broadcast %cst : f32 to vector<2x1x4x128xf32>
      %8 = arith.maximumf %6, %7 : vector<2x1x4x128xf32>
      %c0_6 = arith.constant 0 : index
      %c0_7 = arith.constant 0 : index
      %c0_8 = arith.constant 0 : index
      %c0_9 = arith.constant 0 : index
      %9 = vector.load %arg5[%c0_6, %c0_7, %c0_8, %c0_9] : memref<2x1x4x128xf32, #tpu.memory_space<vmem>>, vector<2x1x4x128xf32>
      tpu.vector_store %arg5[%c0_6, %c0_7, %c0_8, %c0_9], %8 {strides = array<i32>} : memref<2x1x4x128xf32, #tpu.memory_space<vmem>>, vector<2x1x4x128xf32>,
    } else {
    }
    %c0_i32_1 = arith.constant 0 : i32
    %3 = arith.cmpi sgt, %arg0, %c0_i32_1 : i32
    %4 = arith.extui %3 : i1 to i32
    %c0_i32_2 = arith.constant 0 : i32
    %5 = arith.cmpi ne, %4, %c0_i32_2 : i32
    scf.if %5 {
      %c0 = arith.constant 0 : index
      %c0_3 = arith.constant 0 : index
      %c0_4 = arith.constant 0 : index
      %c0_5 = arith.constant 0 : index
      %6 = vector.load %arg4[%c0, %c0_3, %c0_4, %c0_5] : memref<2x1x4x128xf32, #tpu.memory_space<vmem>>, vector<2x1x4x128xf32>
      %7 = math.tanh %6 : vector<2x1x4x128xf32>
      %cst = arith.constant 4.000000e+00 : f32
      %8 = vector.broadcast %cst : f32 to vector<2x1x4x128xf32>
      %9 = arith.mulf %7, %8 : vector<2x1x4x128xf32>
      %10 = math.roundeven %9 : vector<2x1x4x128xf32>
      %c0_6 = arith.constant 0 : index
      %c0_7 = arith.constant 0 : index
      %c0_8 = arith.constant 0 : index
      %c0_9 = arith.constant 0 : index
      %11 = vector.load %arg5[%c0_6, %c0_7, %c0_8, %c0_9] : memref<2x1x4x128xf32, #tpu.memory_space<vmem>>, vector<2x1x4x128xf32>
      tpu.vector_store %arg5[%c0_6, %c0_7, %c0_8, %c0_9], %10 {strides = array<i32>} : memref<2x1x4x128xf32, #tpu.memory_space<vmem>>, vector<2x1x4x128xf32>,
    } else {
    }
    return
  }
  func.func @transform_0(%arg0: i32, %arg1: i32, %arg2: i32, %arg3: i32) -> (i32, i32, i32, i32) {
    %c0_i32 = arith.constant 0 : i32
    return %arg1, %arg0, %arg2, %arg3 : i32, i32, i32, i32
  }
  func.func @transform_1(%arg0: i32, %arg1: i32, %arg2: i32, %arg3: i32) -> (i32, i32, i32, i32) {
    %c0_i32 = arith.constant 0 : i32
    return %arg1, %arg0, %arg2, %arg3 : i32, i32, i32, i32
  }
}

</mosaic_0001>

<bundles_post_ra>
// kernel: tpu_custom_call.1
= control target key start
LH: loop header
LB: loop body
LE: loop exit
PB: predicated region body
PF: predicated region fallthrough
CT: control target
= control target key end

     0   :  { %6 = vsyncpa [#allocation3], 0  ;;  %s700_s0 = inlined_call_operand.hbm [shape: f32[2,2,4,128], index: 0, kind: input, shape index: {}]   ;;  %s701_s1 = inlined_call_operand.hbm [shape: f32[2,2,4,128], index: 1, kind: output, shape index: {}]  }
   0x1   :  { %8 = vsyncpa [#allocation3 + $0x1], 0 }
   0x2   :  { %9 = vsyncpa [#allocation4], 0 }
   0x3   :  { %11 = vsyncpa [#allocation4 + $0x1], 0  ;;  %s547_s6 = smov 0   ;;  %s549_s7 = smov 0  }
   0x4   :  { %s551_s8 = smov 0   ;;  %s553_s9 = smov 0  }
   0x5   :  { %s555_s10 = smov 0   ;;  %s557_s11 = smov 0  }
   0x6 LB: > { %s316_s12 = sadd.s32 4294967295, %s527_s11   ;;  %s317_s13 = sadd.s32 4294967294, %s527_s11   ;;  %s527_s11 = sphi %s557_s11, %s17_s11   ;;  %s523_s10 = sphi %s555_s10, %s712_s10   ;;  %s519_s9 = sphi %s553_s9, %s711_s9   ;;  %s515_s8 = sphi %s551_s8, %s710_s8   ;;  %s511_s7 = sphi %s549_s7, %s709_s7   ;;  %s507_s6 = sphi %s547_s6, %s708_s6  }
   0x7   : > { %s43_s14 = sadd.s32 1, %s523_s10  ;;  %s56_s15 = sadd.s32 1, %s515_s8 }
   0x8   : > { %p45_p0 = scmp.ge.s32.totalorder %s43_s14, 2  ;;  %p63_p1 = scmp.ne.s32.totalorder %s515_s8, %s511_s7 }
   0x9   : > { %p64_p2 = scmp.eq.s32.totalorder %s527_s11, 0  ;;  %p69_p3 = scmp.ne.s32.totalorder %s511_s7, %s507_s6 }
   0xa   : > { %s714_s14 = smov (%p45_p0, %s43_s14), 0  ;;  %p70_p5 = scmp.eq.s32.totalorder %s316_s12, 0 }
   0xb   : > { %p588_p4 = por %p64_p2, %p63_p1  ;;  %s48_s17 = ssub.s32 %s523_s10, %s714_s14 }
   0xc   : > { %p99_p6 = scmp.eq.s32.totalorder %s316_s12, 1  ;;  %p54_p7 = scmp.eq.s32.totalorder %s48_s17, 0 }
   0xd   : > { %p594_p8 = por %p70_p5, %p69_p3  ;;  %p105_p10 = scmp.eq.s32.totalorder %s317_s13, 1 }
   0xe   : > { %p598_p9 = por %p99_p6, %p63_p1  ;;  %p359_p13 = scmp.lt.s32.totalorder %s527_s11, 2 }
   0xf   : > { %s603_s20 = scalar_select %p54_p7, %s515_s8, %s56_s15  }
  0x10   : > { %p605_p11 = por %p105_p10, %p69_p3  ;;  %s125_s22 = sand.u32 1, %s515_s8  }
  0x11   : > { %s320_s23 = sshll.u32 %s125_s22, 3  ;;  %s321_s24 = sshll.u32 %s523_s10, 6 }
  0x12   : > { %s139_s27 = scalar_lea.hbm %s700_s0, %s321_s24  ;;  %s129_s28 = scalar_lea.vmem [#allocation2], %s320_s23 }
  0x13   : > { %s140_s29 = sshll.u32 %s129_s28, 4  ;;  %p618_p0 = pnand %p359_p13, %p588_p4  ;;  %s141_s29 = int_to_ptr.vmem [resolvable:$true] %s140_s29 }
  0x14   : > { %s126_s2 = scalar_lea.sflag [#allocation3], %s125_s22  ;;  %s432_s3 = scalar_lea.vmem %s141_s29, 128 }
  0x15   : > { %p421_p1 = pneg %p618_p0  ;;  %p433_p2 = scmp.ne.s32.totalorder %s141_s29, %s432_s3 }
  0x16   : > { %s529_s4 = smov [#allocation2]  }
  0x17   : > { %p435_p3 = pnand %p433_p2, %p421_p1  ;;  %s437_s5 = sshll.u32 %s529_s4, 4  ;;  %s438_s5 = int_to_ptr.vmem [resolvable:$false] %s437_s5 }
  0x18   : > { %s439_s12 = scalar_lea.vmem %s438_s5, 256  ;;  %p440_p6 = scmp.lt.s32.totalorder %s141_s29, %s438_s5 }
  0x19   : > { %p436_p5 = pneg %p435_p3  ;;  %p441_p7 = scmp.lt.s32.totalorder %s439_s12, %s432_s3 }
  0x1b   : > { %p442_p10 = por %p441_p7, %p440_p6 }
  0x1d   : > { %p443_p12 = pnand %p442_p10, %p436_p5 }
  0x1f   : > { %446 = shalt.err (!%p443_p12)
}
  0x20   : > { %s530_s13 = smov 128   ;;  %s531_s15 = smov 64  }
  0x21   : > { %s532_s16 = smov 4   ;;  %p322_p4 = scmp.ge.s32.totalorder %s527_s11, 1 }
  0x22   : > { %354 = dma.hbm_to_vmem [thread:$0]  (!%p618_p0), %s139_s27, 128, %s141_s29, %s126_s2, %s530_s13, %s531_s15, %s532_s16  }
  0x23   : > { %p148_p13 = scmp.lt.s32.totalorder %s527_s11, 3 }
  0x25   : > { %p149_p1 = pnand %p322_p4, %p148_p13 }
  0x26   : > { %s629_s17 = sand.u32 (!%p149_p1), 1, %s511_s7  }
  0x27   : > { %152 = sbr.rel (%p149_p1) target bundleno = 116 (0x74), region = 24  ;;  %s323_s22 = sshll.u32 (!%p149_p1), %s629_s17, 3 }
  0x28   : > { %s155_s23 = scalar_lea.sflag (!%p149_p1), [#allocation3], %s629_s17  ;;  %s158_s24 = scalar_lea.vmem (!%p149_p1), [#allocation2], %s323_s22 }
  0x2c   : > { %498 = dma.done.wait (%p594_p8), %s155_s23, 128  }
  0x2d   : > { %500 = vsyncadd (%p594_p8), %s155_s23, 4294967168  ;;  %s637_s25 = scalar_lea.vmem [#allocation5], %s323_s22  ;;  %p325_p12 = scmp.ne.s32.totalorder %s519_s9, 0 }
  0x2f   : > { %182 = sbr.rel (%p325_p12) target bundleno = 56 (0x38), region = 32 }
  0x34   : > { %v183_v0 = vld [vmem:[%s158_s24] sm:$0xf]  ;;  %v184_v1 = vld [vmem:[%s158_s24 + $0x4] sm:$0xf] }
  0x35   : > { %v185_v2 = vmax.f32 %v183_v0, 0.0  ;;  %v186_v3 = vmax.f32 %v184_v1, 0.0 }
  0x37   : > { %187 = vst [vmem:[%s637_s25] sm:$0xf] %v185_v2  ;;  %188 = vst [vmem:[%s637_s25 + $0x4] sm:$0xf] %v186_v3 }
  0x38 PF: > { %p326_p0 = scmp.le.s32.totalorder %s519_s9, 0 }
  0x3a   : > { %192 = sbr.rel (%p326_p0) target bundleno = 91 (0x5b), region = 36 }
  0x3f   : > { %v193_v4 = vld [vmem:[%s158_s24] sm:$0xf]  ;;  %v194_v5 = vld [vmem:[%s158_s24 + $0x4] sm:$0xf] }
  0x40   : > { %415 = vtanh.f32 %v193_v4 }
  0x41   : > { %417 = vtanh.f32 %v194_v5 }
  0x4d   : > { %v416_v6 = vpop.eup %415 }
  0x4e   : > { %v418_v7 = vpop.eup %417  ;;  %v197_v8 = vmul.f32 4.0, %v416_v6 }
  0x4f   : > { %v198_v9 = vmul.f32 4.0, %v418_v7 }
  0x50   : > { %v333_v10 = vcvt.f32.s32 %v197_v8  ;;  %v331_v11 = vand.u32 2147483647, %v197_v8  ;;  %v336_v14 = vand.u32 2147483648, %v197_v8 }
  0x51   : > { %v341_v12 = vcvt.f32.s32 %v198_v9  ;;  %v339_v15 = vand.u32 2147483647, %v198_v9  ;;  %v344_v17 = vand.u32 2147483648, %v198_v9 }
  0x52   : > { %v334_v13 = vcvt.s32.f32 %v333_v10  ;;  %vm332_vm0 = vcmp.lt.f32.partialorder %v331_v11, 8388608.0 }
  0x53   : > { %v342_v16 = vcvt.s32.f32 %v341_v12  ;;  %vm340_vm1 = vcmp.lt.f32.partialorder %v339_v15, 8388608.0 }
  0x54   : > { %v335_v18 = vand.u32 2147483647, %v334_v13 }
  0x55   : > { %v343_v19 = vand.u32 2147483647, %v342_v16 }
  0x56   : > { %v337_v20 = vor.u32 %v336_v14, %v335_v18 }
  0x57   : > { %v345_v21 = vor.u32 %v344_v17, %v343_v19 }
  0x58   : > { %v338_v22 = vsel %vm332_vm0, %v337_v20, %v197_v8 }
  0x59   : > { %201 = vst [vmem:[%s637_s25] sm:$0xf] %v338_v22  ;;  %v346_v23 = vsel %vm340_vm1, %v345_v21, %v198_v9 }
  0x5a   : > { %202 = vst [vmem:[%s637_s25 + $0x4] sm:$0xf] %v346_v23 }
  0x5b PF: > { %s328_s18 = sshll.u32 %s519_s9, 6  ;;  %s221_s29 = sshll.u32 %s637_s25, 4  ;;  %s652_s29 = int_to_ptr.vmem [resolvable:$true] %s221_s29 }
  0x5c   : > { %s649_s28 = scalar_lea.hbm %s701_s1, %s328_s18  ;;  %s204_s30 = scalar_lea.sflag [#allocation4], %s629_s17 }
  0x5d   : > { %s447_s2 = scalar_lea.vmem %s652_s29, 128  ;;  %s533_s3 = smov [#allocation5]  }
  0x5e   : > { %p448_p8 = scmp.ne.s32.totalorder %s652_s29, %s447_s2  ;;  %s451_s4 = sshll.u32 %s533_s3, 4  ;;  %s452_s4 = int_to_ptr.vmem [resolvable:$false] %s451_s4 }
  0x5f   : > { %s453_s9 = scalar_lea.vmem %s452_s4, 256  ;;  %p454_p5 = scmp.lt.s32.totalorder %s652_s29, %s452_s4 }
  0x60   : > { %p449_p2 = pnand %p448_p8, %p598_p9  ;;  %p455_p6 = scmp.lt.s32.totalorder %s453_s9, %s447_s2 }
  0x62   : > { %p450_p3 = pneg %p449_p2  ;;  %p456_p7 = por %p455_p6, %p454_p5 }
  0x64   : > { %p457_p10 = pnand %p456_p7, %p450_p3 }
  0x66   : > { %460 = shalt.err (!%p457_p10)
}
  0x67   : > { %s461_s5 = scalar_lea.hbm %s649_s28, 128  ;;  %s465_s15 = scalar_lea.hbm %s701_s1, 256 }
  0x68   : > { %p462_p4 = scmp.ne.s32.totalorder %s649_s28, %s461_s5  ;;  %p466_p12 = scmp.lt.s32.totalorder %s649_s28, %s701_s1 }
  0x69   : > { %p467_p0 = scmp.lt.s32.totalorder %s465_s15, %s461_s5 }
  0x6a   : > { %p463_p13 = pnand %p462_p4, %p598_p9 }
  0x6b   : > { %p468_p8 = por %p467_p0, %p466_p12 }
  0x6c   : > { %p464_p1 = pneg %p463_p13 }
  0x6e   : > { %p469_p2 = pnand %p468_p8, %p464_p1 }
  0x70   : > { %472 = shalt.err (!%p469_p2)
}
  0x71   : > { %s534_s23 = smov 64   ;;  %s535_s24 = smov 128  }
  0x72   : > { %s536_s25 = smov 4  }
  0x73   : > { %349 = dma.vmem_to_hbm [thread:$0]  (%p598_p9), %s652_s29, 128, %s649_s28, %s204_s30, %s534_s23, %s535_s24, %s536_s25  }
  0x74 PF: > { %s236_s18 = sand.u32 1, %s507_s6   ;;  %p707_p3 = scmp.ge.s32.totalorder %s527_s11, 2 }
  0x75   : > { %s237_s26 = scalar_lea.sflag [#allocation4], %s236_s18 }
  0x76   : > { %p356_p5 = pnand %p707_p3, %p605_p11 }
  0x78   : > { %p357_p6 = pneg %p356_p5 }
  0x7a   : > { %502 = dma.done.wait (%p357_p6), %s237_s26, 128  }
  0x7b   : > { %504 = vsyncadd (%p357_p6), %s237_s26, 4294967168  ;;  %s17_s11 = sadd.s32 1, %s527_s11   ;;  %s708_s6 = smov %s511_s7 }
  0x7c   : > { %p14_p7 = scmp.ge.s32.totalorder %s17_s11, 4   ;;  %s709_s7 = smov %s515_s8 }
  0x7d   : > { %s710_s8 = smov %s603_s20  ;;  %s711_s9 = smov %s523_s10 }
  0x7e   : > { %s712_s10 = smov %s714_s14  ;;  %16 = sbr.rel (!%p14_p7) target bundleno = 6 (0x6), region = 77 }
  0x83   :  { %242 = vsyncpa [#allocation3], 1 }
  0x84   :  { %244 = vsyncpa [#allocation3 + $0x1], 1 }
  0x85   :  { %245 = vsyncpa [#allocation4], 1 }
  0x86   :  { %247 = vsyncpa [#allocation4 + $0x1], 1 }

</bundles_post_ra>
